<compile_context>
chip_gen: v5e
topology: v5e:2x2
jax: 0.10.0
libtpu: 0.0.40
codegen_flags: <defaults>
</compile_context>

<pallas_src>
import functools

import jax
import jax.numpy as jnp
from jax.experimental import pallas as pl
from jax.experimental.pallas import tpu as pltpu

_LANE = 128
_SUBLANE = 8
_MIB = 1024 * 1024


def _round_up(n: int, m: int) -> int:
    return ((n + m - 1) // m) * m


def _floor_mult(n: int, m: int) -> int:
    return max(m, (n // m) * m)


@functools.lru_cache(maxsize=1)
def _physical_vmem_bytes() -> int:
    """Best-effort per-core VMEM capacity (128 MiB on v4/v5e/v6e, 64 MiB on v7x)."""
    try:
        info = pltpu.get_tpu_info()
        v = getattr(info, "vmem_capacity_bytes", None)
        if v:
            return int(v)
    except Exception:
        pass
    try:
        kind = jax.devices()[0].device_kind.lower()
        if any(tag in kind for tag in ("v4", "v5", "v6")):
            return 128 * _MIB
    except Exception:
        pass
    return 64 * _MIB  # conservative (v7x-like)


def _gelu(x, approximate: bool):
    if approximate:
        # tanh approximation -> transcendental goes to the EUP slot (frees the VALU).
        c = 0.7978845608028654  # sqrt(2/pi)
        return 0.5 * x * (1.0 + jnp.tanh(c * (x + 0.044715 * (x * x * x))))
    # torch.nn.GELU() default: exact erf-based GELU.
    return 0.5 * x * (1.0 + jax.lax.erf(x * 0.7071067811865476))


# ----------------------------------------------------------------------------- kernels
def _ffn_body_acc(x_ref, w1_ref, b1_ref, w2_ref, b2_ref, o_ref, acc_ref, approximate):
    # Grid step (i, k):
    #   x_ref  : (block_m, d_model_p)   resident across k
    #   w1_ref : (d_model_p, block_ff)  k-th d_ff chunk of W1
    #   b1_ref : (1, block_ff)
    #   w2_ref : (block_ff, d_model_p)  k-th d_ff chunk of W2
    #   b2_ref : (1, d_model_p)
    #   o_ref  : (block_m, d_model_p)   written on last k only
    #   acc_ref: (block_m, d_model_p)   f32 accumulator scratch
    k = pl.program_id(1)

    @pl.when(k == 0)
    def _init():
        acc_ref[...] = jnp.zeros_like(acc_ref)

    h = jnp.dot(x_ref[...], w1_ref[...], preferred_element_type=jnp.float32)
    h = _gelu(h + b1_ref[...], approximate)  # f32 bias + GELU; dropout(p=0) -> identity
    acc_ref[...] += jnp.dot(h.astype(w2_ref.dtype), w2_ref[...],
                            preferred_element_type=jnp.float32)

    @pl.when(k == pl.num_programs(1) - 1)
    def _finalize():
        o_ref[...] = (acc_ref[...] + b2_ref[...]).astype(o_ref.dtype)


def _ffn_body_f32out(x_ref, w1_ref, b1_ref, w2_ref, b2_ref, o_ref, approximate):
    # float32 output: accumulate directly into the k-resident output block,
    # no separate scratch (VMEM saving, matters under v7x's 64 MiB).
    k = pl.program_id(1)

    @pl.when(k == 0)
    def _init():
        o_ref[...] = jnp.zeros_like(o_ref)

    h = jnp.dot(x_ref[...], w1_ref[...], preferred_element_type=jnp.float32)
    h = _gelu(h + b1_ref[...], approximate)
    o_ref[...] += jnp.dot(h.astype(w2_ref.dtype), w2_ref[...],
                          preferred_element_type=jnp.float32)

    @pl.when(k == pl.num_programs(1) - 1)
    def _finalize():
        o_ref[...] += b2_ref[...]


# ----------------------------------------------------------------------------- tiling
def _select_tiles(M, d_model, d_ff, mm_itemsize, out_itemsize, block_m, block_ff):
    """Static (trace-time) tile selection, generation aware."""
    d_model_p = _round_up(d_model, _LANE)
    d_ff_base = _round_up(d_ff, _LANE)

    vmem_phys = _physical_vmem_bytes()
    big_vmem = vmem_phys >= 100 * _MIB          # v4/v5e/v6e (128 MiB physical)
    budget = (100 if big_vmem else 40) * _MIB   # working-set budget
    vmem_limit = (100 if big_vmem else 46) * _MIB

    if block_ff is None:
        # Keep W1/W2 fully VMEM-resident when they fit: k axis collapses to 1 and
        # weights are DMA'd once instead of once per M tile.
        resident_thresh = (16 if big_vmem else 10) * _MIB
        if 2 * d_model_p * d_ff_base * mm_itemsize <= resident_thresh:
            block_ff = d_ff_base
        else:
            block_ff = 1024 if big_vmem else 512
    block_ff = max(_LANE, min(_round_up(block_ff, _LANE), d_ff_base))

    if block_m is None:
        block_m = 1024 if big_vmem else 512
    m8 = _round_up(M, _SUBLANE)
    block_m = max(_SUBLANE, min(_round_up(block_m, _SUBLANE), m8))
    # Guarantee >= 2 M tiles when possible so the "parallel" axis can shard
    # across both TensorCores (v7x megacore); extra grid step cost is negligible.
    if block_m == m8 and m8 >= 2 * _SUBLANE:
        block_m = _round_up((m8 + 1) // 2, _SUBLANE)

    use_acc = out_itemsize != 4  # non-f32 outputs need an f32 scratch accumulator

    def footprint(bm, bf):
        x_b = 2 * bm * d_model_p * mm_itemsize          # x, double buffered
        w_b = 2 * 2 * d_model_p * bf * mm_itemsize      # W1 + W2 chunks, double buffered
        bias_b = 2 * (bf + d_model_p) * 4               # b1 + b2
        out_b = 2 * bm * d_model_p * out_itemsize       # output, double buffered
        acc_b = bm * d_model_p * 4 if use_acc else 0    # f32 scratch
        return x_b + w_b + bias_b + out_b + acc_b

    # Shrink block_ff first, then block_m, until the working set fits the budget.
    while footprint(block_m, block_ff) > budget:
        if block_ff > _LANE:
            block_ff = _floor_mult(block_ff // 2, _LANE)
        elif block_m > _SUBLANE:
            block_m = _floor_mult(block_m // 2, _SUBLANE)
        else:
            break

    return block_m, block_ff, d_model_p, use_acc, vmem_limit


# ----------------------------------------------------------------------------- wrapper
@functools.partial(
    jax.jit,
    static_argnames=("block_m", "block_ff", "compute_dtype", "gelu_approximate"))
def positionwise_ffn(x, w1, b1, w2, b2, *, block_m=None, block_ff=None,
                     compute_dtype=jnp.bfloat16, gelu_approximate=False):
    """y = Linear2(Dropout_{p=0}(GELU(Linear1(x)))).

    Weights are stored as (in, out): y = x @ W + b, matching PyTorch nn.Linear
    (which computes y = x @ W.T + b with W: (out, in)).
    compute_dtype: matmul-operand dtype (bf16 default, MXU-native); accumulation,
    bias and GELU math stay in f32. Pass jnp.float32 (or None -> x.dtype) for parity.
    """
    orig_shape = x.shape
    d_model = orig_shape[-1]
    d_ff = w1.shape[-1]
    out_dtype = x.dtype

    x2 = x.reshape(-1, d_model)
    M = x2.shape[0]

    mm_dtype = jnp.dtype(compute_dtype) if compute_dtype is not None else jnp.dtype(x.dtype)
    if x2.dtype != mm_dtype:
        x2 = x2.astype(mm_dtype)
    if w1.dtype != mm_dtype:
        w1 = w1.astype(mm_dtype)
    if w2.dtype != mm_dtype:
        w2 = w2.astype(mm_dtype)
    b1_2d = b1.reshape(1, d_ff).astype(jnp.float32)
    b2_2d = b2.reshape(1, d_model).astype(jnp.float32)

    mm_itemsize = mm_dtype.itemsize
    out_itemsize = jnp.dtype(out_dtype).itemsize

    block_m, block_ff, d_model_p, use_acc, vmem_limit = _select_tiles(
        M, d_model, d_ff, mm_itemsize, out_itemsize, block_m, block_ff)

    m_p = _round_up(M, block_m)
    d_ff_p = _round_up(d_ff, block_ff)

    # Zero-padding is numerically exact here: padded d_ff columns give
    # gelu(0 + 0) = 0 and the matching W2 rows are 0; padded rows/cols of the
    # output are sliced away. Pads are skipped entirely when already aligned.
    # TODO(synk): in a real module, pre-pad/cast the weights once at init instead
    # of on every forward call.
    def pad2(a, rows, cols):
        pr, pc = rows - a.shape[0], cols - a.shape[1]
        return a if (pr == 0 and pc == 0) else jnp.pad(a, ((0, pr), (0, pc)))

    x2p = pad2(x2, m_p, d_model_p)
    w1p = pad2(w1, d_model_p, d_ff_p)
    b1p = pad2(b1_2d, 1, d_ff_p)
    w2p = pad2(w2, d_ff_p, d_model_p)
    b2p = pad2(b2_2d, 1, d_model_p)

    n_m = m_p // block_m
    n_k = d_ff_p // block_ff
    grid = (n_m, n_k)

    # When weights are resident (n_k == 1) they are only DMA'd once; otherwise
    # they are re-streamed once per M tile.
    weight_passes = n_m if n_k > 1 else 1
    cost = pl.CostEstimate(
        flops=4 * m_p * d_model_p * d_ff_p,               # two matmuls
        transcendentals=m_p * d_ff_p,                     # erf/tanh per hidden element
        bytes_accessed=(m_p * d_model_p * mm_itemsize
                        + weight_passes * 2 * d_model_p * d_ff_p * mm_itemsize
                        + m_p * d_model_p * out_itemsize),
    )

    in_specs = [
        pl.BlockSpec((block_m, d_model_p), lambda i, k: (i, 0)),   # x tile (resident over k)
        pl.BlockSpec((d_model_p, block_ff), lambda i, k: (0, k)),  # W1 d_ff chunk
        pl.BlockSpec((1, block_ff), lambda i, k: (0, k)),          # b1 chunk
        pl.BlockSpec((block_ff, d_model_p), lambda i, k: (k, 0)),  # W2 d_ff chunk
        pl.BlockSpec((1, d_model_p), lambda i, k: (0, 0)),         # b2
    ]
    out_spec = pl.BlockSpec((block_m, d_model_p), lambda i, k: (i, 0))

    if use_acc:
        def kernel(x_ref, w1_ref, b1_ref, w2_ref, b2_ref, o_ref, acc_ref):
            _ffn_body_acc(x_ref, w1_ref, b1_ref, w2_ref, b2_ref, o_ref, acc_ref,
                          gelu_approximate)
        scratch = [pltpu.VMEM((block_m, d_model_p), jnp.float32)]
    else:
        def kernel(x_ref, w1_ref, b1_ref, w2_ref, b2_ref, o_ref):
            _ffn_body_f32out(x_ref, w1_ref, b1_ref, w2_ref, b2_ref, o_ref,
                             gelu_approximate)
        scratch = []

    out = pl.pallas_call(
        kernel,
        out_shape=jax.ShapeDtypeStruct((m_p, d_model_p), out_dtype),
        grid_spec=pltpu.PrefetchScalarGridSpec(
            num_scalar_prefetch=0,
            grid=grid,
            in_specs=in_specs,
            out_specs=out_spec,
            scratch_shapes=scratch,
        ),
        compiler_params=pltpu.CompilerParams(
            dimension_semantics=("parallel", "arbitrary"),
            vmem_limit_bytes=vmem_limit,
        ),
        cost_estimate=cost,
    )(x2p, w1p, b1p, w2p, b2p)

    if m_p != M or d_model_p != d_model:
        out = out[:M, :d_model]
    return out.reshape(orig_shape)


def _ref_ffn(x, w1, b1, w2, b2):
    h = jnp.dot(x, w1) + b1
    h = jax.nn.gelu(h, approximate=False)
    return jnp.dot(h, w2) + b2


if __name__ == "__main__":
    # Small shapes consistent with the module: (batch, seq, d_model) -> same.
    batch, seq, d_model, d_ff = 2, 16, 32, 64
    key = jax.random.PRNGKey(0)
    kx, k1, k2, k3, k4 = jax.random.split(key, 5)

    x = jax.random.normal(kx, (batch, seq, d_model), dtype=jnp.float32)
    # Synthetic parameters with nn.Linear shapes (stored as (in, out)).
    w1 = jax.random.normal(k1, (d_model, d_ff), dtype=jnp.float32) * 0.05
    b1 = jax.random.normal(k2, (d_ff,), dtype=jnp.float32) * 0.05
    w2 = jax.random.normal(k3, (d_ff, d_model), dtype=jnp.float32) * 0.05
    b2 = jax.random.normal(k4, (d_model,), dtype=jnp.float32) * 0.05

    ref = _ref_ffn(x, w1, b1, w2, b2)

    # Default fast path: bf16 MXU operands, f32 accumulation, exact-erf GELU,
    # f32 output accumulated directly in the output block (no scratch).
    out_fast = jax.block_until_ready(positionwise_ffn(x, w1, b1, w2, b2))
    assert out_fast.shape == x.shape
    assert jnp.allclose(out_fast, ref, atol=5e-2, rtol=5e-2), "bf16 mismatch vs reference"

    # Exact f32 parity path (matches the PyTorch module semantics).
    out_f32 = jax.block_until_ready(
        positionwise_ffn(x, w1, b1, w2, b2, compute_dtype=jnp.float32))
    assert jnp.allclose(out_f32, ref, atol=1e-5, rtol=1e-5), "f32 mismatch vs reference"

    # Optional EUP-routed tanh GELU (perf flag); f32 compute isolates the approximation.
    out_tanh = jax.block_until_ready(
        positionwise_ffn(x, w1, b1, w2, b2, compute_dtype=jnp.float32,
                         gelu_approximate=True))
    assert jnp.allclose(out_tanh, ref, atol=5e-3, rtol=5e-3), "tanh-GELU mismatch"

    # bf16 activations exercise the f32-scratch accumulator kernel variant.
    out_bf16_act = jax.block_until_ready(
        positionwise_ffn(x.astype(jnp.bfloat16), w1, b1, w2, b2))
    assert out_bf16_act.dtype == jnp.bfloat16
    assert jnp.allclose(out_bf16_act.astype(jnp.float32), ref, atol=5e-2, rtol=5e-2), \
        "bf16-activation mismatch vs reference"

    print("KERNEL_OK")
</pallas_src>

<mosaic_0001>
module attributes {stable_mosaic.version = 11 : i64} {
  func.func @kernel(%arg0: i32, %arg1: i32, %arg2: memref<16x128xbf16, #tpu.memory_space<vmem>>, %arg3: memref<128x128xbf16, #tpu.memory_space<vmem>>, %arg4: memref<1x128xf32, #tpu.memory_space<vmem>>, %arg5: memref<128x128xbf16, #tpu.memory_space<vmem>>, %arg6: memref<1x128xf32, #tpu.memory_space<vmem>>, %arg7: memref<16x128xf32, #tpu.memory_space<vmem>>) attributes {dimension_semantics = [#tpu.dimension_semantics<parallel>, #tpu.dimension_semantics<arbitrary>], iteration_bounds = array<i64: 2, 1>, scalar_prefetch = 0 : i64, scratch_operands = 0 : i64, tpu.core_type = #tpu.core_type<tc>, window_params = [{transform_indices = @transform_0, window_bounds = array<i64: 16, 128>}, {transform_indices = @transform_1, window_bounds = array<i64: 128, 128>}, {transform_indices = @transform_2, window_bounds = array<i64: 1, 128>}, {transform_indices = @transform_3, window_bounds = array<i64: 128, 128>}, {pipeline_mode = #tpu.pipeline_mode<synchronous>, transform_indices = @transform_4, window_bounds = array<i64: 1, 128>}, {transform_indices = @transform_5, window_bounds = array<i64: 16, 128>}]} {
    %c0_i32 = arith.constant 0 : i32
    %0 = arith.cmpi eq, %arg1, %c0_i32 : i32
    %1 = arith.extui %0 : i1 to i32
    %c0_i32_0 = arith.constant 0 : i32
    %2 = arith.cmpi ne, %1, %c0_i32_0 : i32
    scf.if %2 {
      %cst_18 = arith.constant 0.000000e+00 : f32
      %26 = vector.broadcast %cst_18 : f32 to vector<16x128xf32>
      %c0_19 = arith.constant 0 : index
      %c0_20 = arith.constant 0 : index
      %27 = vector.load %arg7[%c0_19, %c0_20] : memref<16x128xf32, #tpu.memory_space<vmem>>, vector<16x128xf32>
      tpu.vector_store %arg7[%c0_19, %c0_20], %26 {strides = array<i32>} : memref<16x128xf32, #tpu.memory_space<vmem>>, vector<16x128xf32>,
    } else {
    }
    %c0 = arith.constant 0 : index
    %c0_1 = arith.constant 0 : index
    %3 = vector.load %arg2[%c0, %c0_1] : memref<16x128xbf16, #tpu.memory_space<vmem>>, vector<16x128xbf16>
    %c0_2 = arith.constant 0 : index
    %c0_3 = arith.constant 0 : index
    %4 = vector.load %arg3[%c0_2, %c0_3] : memref<128x128xbf16, #tpu.memory_space<vmem>>, vector<128x128xbf16>
    %cst = arith.constant dense<0.000000e+00> : vector<16x128xf32>
    %5 = tpu.matmul %3, %4, %cst {dimension_numbers = #tpu.dot_dimension_numbers<[1], [0], [0], [1], [0, 0, 1, 1], [], []>} : vector<16x128xbf16>, vector<128x128xbf16>, vector<16x128xf32> -> vector<16x128xf32>
    %c0_4 = arith.constant 0 : index
    %c0_5 = arith.constant 0 : index
    %6 = vector.load %arg4[%c0_4, %c0_5] : memref<1x128xf32, #tpu.memory_space<vmem>>, vector<1x128xf32>
    %7 = vector.broadcast %6 : vector<1x128xf32> to vector<16x128xf32>
    %8 = arith.addf %5, %7 : vector<16x128xf32>
    %cst_6 = arith.constant 5.000000e-01 : f32
    %9 = vector.broadcast %cst_6 : f32 to vector<16x128xf32>
    %10 = arith.mulf %9, %8 : vector<16x128xf32>
    %cst_7 = arith.constant 0.707106769 : f32
    %11 = vector.broadcast %cst_7 : f32 to vector<16x128xf32>
    %12 = arith.mulf %8, %11 : vector<16x128xf32>
    %13 = math.erf %12 : vector<16x128xf32>
    %cst_8 = arith.constant 1.000000e+00 : f32
    %14 = vector.broadcast %cst_8 : f32 to vector<16x128xf32>
    %15 = arith.addf %14, %13 : vector<16x128xf32>
    %16 = arith.mulf %10, %15 : vector<16x128xf32>
    %c0_9 = arith.constant 0 : index
    %c0_10 = arith.constant 0 : index
    %17 = vector.load %arg7[%c0_9, %c0_10] : memref<16x128xf32, #tpu.memory_space<vmem>>, vector<16x128xf32>
    %18 = arith.truncf %16 : vector<16x128xf32> to vector<16x128xbf16>
    %c0_11 = arith.constant 0 : index
    %c0_12 = arith.constant 0 : index
    %19 = vector.load %arg5[%c0_11, %c0_12] : memref<128x128xbf16, #tpu.memory_space<vmem>>, vector<128x128xbf16>
    %cst_13 = arith.constant dense<0.000000e+00> : vector<16x128xf32>
    %20 = tpu.matmul %18, %19, %cst_13 {dimension_numbers = #tpu.dot_dimension_numbers<[1], [0], [0], [1], [0, 0, 1, 1], [], []>} : vector<16x128xbf16>, vector<128x128xbf16>, vector<16x128xf32> -> vector<16x128xf32>
    %21 = arith.addf %17, %20 : vector<16x128xf32>
    %c0_14 = arith.constant 0 : index
    %c0_15 = arith.constant 0 : index
    %22 = vector.load %arg7[%c0_14, %c0_15] : memref<16x128xf32, #tpu.memory_space<vmem>>, vector<16x128xf32>
    tpu.vector_store %arg7[%c0_14, %c0_15], %21 {strides = array<i32>} : memref<16x128xf32, #tpu.memory_space<vmem>>, vector<16x128xf32>,
    %c0_i32_16 = arith.constant 0 : i32
    %23 = arith.cmpi eq, %arg1, %c0_i32_16 : i32
    %24 = arith.extui %23 : i1 to i32
    %c0_i32_17 = arith.constant 0 : i32
    %25 = arith.cmpi ne, %24, %c0_i32_17 : i32
    scf.if %25 {
      %c0_18 = arith.constant 0 : index
      %c0_19 = arith.constant 0 : index
      %26 = vector.load %arg7[%c0_18, %c0_19] : memref<16x128xf32, #tpu.memory_space<vmem>>, vector<16x128xf32>
      %c0_20 = arith.constant 0 : index
      %c0_21 = arith.constant 0 : index
      %27 = vector.load %arg6[%c0_20, %c0_21] : memref<1x128xf32, #tpu.memory_space<vmem>>, vector<1x128xf32>
      %28 = vector.broadcast %27 : vector<1x128xf32> to vector<16x128xf32>
      %29 = arith.addf %26, %28 : vector<16x128xf32>
      %c0_22 = arith.constant 0 : index
      %c0_23 = arith.constant 0 : index
      %30 = vector.load %arg7[%c0_22, %c0_23] : memref<16x128xf32, #tpu.memory_space<vmem>>, vector<16x128xf32>
      tpu.vector_store %arg7[%c0_22, %c0_23], %29 {strides = array<i32>} : memref<16x128xf32, #tpu.memory_space<vmem>>, vector<16x128xf32>,
    } else {
    }
    return
  }
  func.func @transform_0(%arg0: i32, %arg1: i32) -> (i32, i32) {
    %c0_i32 = arith.constant 0 : i32
    %c0_i32_0 = arith.constant 0 : i32
    return %arg0, %c0_i32 : i32, i32
  }
  func.func @transform_1(%arg0: i32, %arg1: i32) -> (i32, i32) {
    %c0_i32 = arith.constant 0 : i32
    %c0_i32_0 = arith.constant 0 : i32
    return %c0_i32, %arg1 : i32, i32
  }
  func.func @transform_2(%arg0: i32, %arg1: i32) -> (i32, i32) {
    %c0_i32 = arith.constant 0 : i32
    %c0_i32_0 = arith.constant 0 : i32
    return %c0_i32, %arg1 : i32, i32
  }
  func.func @transform_3(%arg0: i32, %arg1: i32) -> (i32, i32) {
    %c0_i32 = arith.constant 0 : i32
    %c0_i32_0 = arith.constant 0 : i32
    return %arg1, %c0_i32 : i32, i32
  }
  func.func @transform_4(%arg0: i32, %arg1: i32) -> (i32, i32) {
    %c0_i32 = arith.constant 0 : i32
    %c0_i32_0 = arith.constant 0 : i32
    %c0_i32_1 = arith.constant 0 : i32
    return %c0_i32, %c0_i32_0 : i32, i32
  }
  func.func @transform_5(%arg0: i32, %arg1: i32) -> (i32, i32) {
    %c0_i32 = arith.constant 0 : i32
    %c0_i32_0 = arith.constant 0 : i32
    return %arg0, %c0_i32 : i32, i32
  }
}

</mosaic_0001>

<bundles_post_ra>
// kernel: positionwise_ffn.1
= control target key start
LH: loop header
LB: loop body
LE: loop exit
PB: predicated region body
PF: predicated region fallthrough
CT: control target
= control target key end

     0   :  { %10 = vsyncpa [#allocation3], 0  ;;  %s1149_s0 = inlined_call_operand.vmem [shape: bf16[32,128], index: 0, kind: input, shape index: {}]   ;;  %s1150_s1 = inlined_call_operand.vmem [shape: bf16[128,128], index: 1, kind: input, shape index: {}]   ;;  %s1151_s2 = inlined_call_operand.vmem [shape: f32[1,128], index: 2, kind: input, shape index: {}]   ;;  %s1152_s3 = inlined_call_operand.vmem [shape: bf16[128,128], index: 3, kind: input, shape index: {}]   ;;  %s1153_s4 = inlined_call_operand.vmem [shape: f32[1,128], index: 4, kind: input, shape index: {}]   ;;  %s1154_s5 = inlined_call_operand.hbm [shape: f32[32,128], index: 5, kind: output, shape index: {}]  }
   0x1   :  { %12 = vsyncpa [#allocation3 + $0x1], 0  ;;  %s981_s18 = smov 0   ;;  %s983_s19 = smov 0  }
   0x2   :  { %s985_s20 = smov 0   ;;  %s987_s21 = smov 0  }
   0x3   :  { %s989_s22 = smov 0   ;;  %s991_s23 = smov 0  }
   0x4 LB: > { %s701_s24 = sadd.s32 4294967295, %s947_s23   ;;  %s702_s25 = sadd.s32 4294967294, %s947_s23   ;;  %s947_s23 = sphi %s991_s23, %s18_s23   ;;  %s943_s22 = sphi %s989_s22, %s1161_s22   ;;  %s939_s21 = sphi %s987_s21, %s1160_s21   ;;  %s935_s20 = sphi %s985_s20, %s1159_s20   ;;  %s931_s19 = sphi %s983_s19, %s1158_s19   ;;  %s927_s18 = sphi %s981_s18, %s1157_s18  }
   0x5   : > { %s30_s26 = sadd.s32 1, %s943_s22  ;;  %s162_s27 = sadd.s32 1, %s935_s20 }
   0x6   : > { %p32_p0 = scmp.ge.s32.totalorder %s30_s26, 2  ;;  %p172_p1 = scmp.ne.s32.totalorder %s935_s20, %s931_s19 }
   0x7   : > { %p173_p2 = scmp.eq.s32.totalorder %s701_s24, 1  ;;  %p178_p3 = scmp.ne.s32.totalorder %s931_s19, %s927_s18 }
   0x8   : > { %s1163_s26 = smov (%p32_p0, %s30_s26), 0  ;;  %p179_p5 = scmp.eq.s32.totalorder %s702_s25, 1 }
   0x9   : > { %p1021_p4 = por %p173_p2, %p172_p1  ;;  %s159_s29 = ssub.s32 %s943_s22, %s1163_s26 }
   0xa   : > { %p708_p6 = scmp.ge.s32.totalorder %s947_s23, 1  ;;  %p160_p7 = scmp.eq.s32.totalorder %s159_s29, 0 }
   0xb   : > { %p1028_p8 = por %p179_p5, %p178_p3  ;;  %p231_p9 = scmp.lt.s32.totalorder %s947_s23, 3 }
   0xc   : > { %s1034_s6 = scalar_select %p160_p7, %s935_s20, %s162_s27  }
   0xd   : > { %p232_p10 = pnand %p708_p6, %p231_p9 }
   0xe   : > { %s710_s15 = sshll.u32 (!%p232_p10), %s939_s21, 1  ;;  %s268_s17 = sand.u32 (!%p232_p10), 1, %s931_s19  }
   0xf   : > { %235 = sbr.rel (%p232_p10) target bundleno = 381 (0x17d), region = 40  ;;  %p272_p11 = scmp.lt.s32.totalorder (!%p232_p10), %s710_s15, 3 }
  0x10   : > { %s804_s27 = sshll.u32 (!%p232_p10), %s939_s21, 4 }
  0x11   : > { %s585_s8 = scalar_lea.hbm (!%p232_p10), %s1154_s5, %s804_s27 }
  0x12   : > { %s588_s11 = sshll.u32 (!%p232_p10), %s585_s8, 4  ;;  %s589_s11 = int_to_ptr.hbm [resolvable:$true] %s588_s11 }
  0x13   : > { %s883_s13 = sshra.s32 (!%p232_p10), %s589_s11, 4  ;;  %s884_s13 = int_to_ptr.hbm [resolvable:$true] %s883_s13 }
  0x14   : > { %v795_v0 = vld [vmem:[%s1150_s1 + $0x38] sm:$0xff]  ;;  %v794_v1 = vld [vmem:[%s1150_s1 + $0x30] sm:$0xff]  ;;  %v793_v2 = vld [vmem:[%s1150_s1 + $0x28] sm:$0xff]  ;;  %s1165_s15 = smov (!%p272_p11, %s710_s15), 3  ;;  %s885_s14 = scalar_lea.hbm %s884_s13, 16 }
  0x15   : > { %373 = vmatpush.bf16.msra.mxu0 %v795_v0  ;;  %v792_v3 = vld [vmem:[%s1150_s1 + $0x20] sm:$0xff]  ;;  %v791_v4 = vld [vmem:[%s1150_s1 + $0x18] sm:$0xff]  ;;  %v790_v5 = vld [vmem:[%s1150_s1 + $0x10] sm:$0xff]  ;;  %s711_s7 = sshll.u32 %s1165_s15, 2  ;;  %s709_s15 = sshll.u32 %s268_s17, 4 }
  0x16   : > { %v789_v6 = vld [vmem:[%s1150_s1 + $0x8] sm:$0xff]  ;;  %v788_v7 = vld [vmem:[%s1150_s1] sm:$0xff]  ;;  %s275_s12 = scalar_lea.vmem %s1149_s0, %s711_s7  ;;  %v803_v10 = vld [vmem:[%s1152_s3 + $0x38] sm:$0xff]  ;;  %s270_s9 = scalar_lea.vmem [#allocation2], %s709_s15 }
  0x17   : > { %v787_v8 = vld [vmem:[%s275_s12] sm:$0xff]  ;;  %542 = vmatpush.bf16.msra.mxu1 %v803_v10  ;;  %v802_v14 = vld [vmem:[%s1152_s3 + $0x30] sm:$0xff]  ;;  %v801_v16 = vld [vmem:[%s1152_s3 + $0x28] sm:$0xff]  ;;  %s586_s10 = sshll.u32 %s270_s9, 4  ;;  %s574_s12 = scalar_lea.sflag [#allocation3], %s268_s17  ;;  %s587_s10 = int_to_ptr.vmem [resolvable:$true] %s586_s10 }
  0x18   : > { %v863_v9 = vld [vmem:[%s1151_s2] ss:$0 sm:$0xff]  ;;  %v799_v27 = vld [vmem:[%s1152_s3 + $0x18] sm:$0xff]  ;;  %v798_v33 = vld [vmem:[%s1152_s3 + $0x10] sm:$0xff]  ;;  %p886_p12 = scmp.ne.s32.totalorder %s884_s13, %s885_s14  ;;  %s889_s15 = scalar_lea.hbm %s1154_s5, 32 }
  0x19   : > { %374 = vmatpush.bf16.msra.mxu0 %v794_v1  ;;  %v800_v21 = vld [vmem:[%s1152_s3 + $0x20] sm:$0xff]  ;;  %v797_v41 = vld [vmem:[%s1152_s3 + $0x8] sm:$0xff]  ;;  %p890_p1 = scmp.lt.s32.totalorder %s884_s13, %s1154_s5  ;;  %p891_p2 = scmp.lt.s32.totalorder %s889_s15, %s885_s14 }
  0x1a   : > { %v796_v48 = vld [vmem:[%s1152_s3] sm:$0xff]  ;;  %p887_p13 = pnand %p886_p12, %p1021_p4 }
  0x1b   : > { %543 = vmatpush.bf16.msra.mxu1 %v802_v14  ;;  %p892_p3 = por %p891_p2, %p890_p1 }
  0x1c   : > { %p888_p0 = pneg %p887_p13 }
  0x1d   : > { %375 = vmatpush.bf16.msra.mxu0 %v793_v2 }
  0x1e   : > { %p893_p5 = pnand %p892_p3, %p888_p0 }
  0x1f   : > { %544 = vmatpush.bf16.msra.mxu1 %v801_v16 }
  0x21   : > { %376 = vmatpush.bf16.msra.mxu0 %v792_v3 }
  0x23   : > { %545 = vmatpush.bf16.msra.mxu1 %v800_v21 }
  0x25   : > { %377 = vmatpush.bf16.msra.mxu0 %v791_v4 }
  0x27   : > { %546 = vmatpush.bf16.msra.mxu1 %v799_v27 }
  0x29   : > { %378 = vmatpush.bf16.msra.mxu0 %v790_v5 }
  0x2b   : > { %547 = vmatpush.bf16.msra.mxu1 %v798_v33 }
  0x2d   : > { %379 = vmatpush.bf16.msra.mxu0 %v789_v6 }
  0x2f   : > { %548 = vmatpush.bf16.msra.mxu1 %v797_v41 }
  0x31   : > { %380 = vmatpush.bf16.msra.mxu0 %v788_v7 }
  0x33   : > { %549 = vmatpush.bf16.msra.mxu1 %v796_v48 }
  0x34   : > { %381 = vmatmul.bf16.vlgmr.msra.gmra.mxu0 %v787_v8 }
  0xb1   : > { %v382_v11 = vpop.f32.mrf.mxu0 }
  0xb2   : > { %v1070_v12 = vadd.f32 %v863_v9, %v382_v11 }
  0xb4   : > { %v1073_v13 = vmul.f32 0.70710677, %v1070_v12 }
  0xb6   : > { %v391_v15 = vmul.f32 %v1073_v13, %v1073_v13 }
  0xb8   : > { %v392_v17 = vmin.f32 %v391_v15, 16.0 }
  0xb9   : > { %v384_v18 = vpop.f32.mrf.mxu0 }
  0xba   : > { %v393_v19 = vmul.f32 2.1237322e-06, %v392_v17  ;;  %v1083_v20 = vadd.f32 %v863_v9, %v384_v18  ;;  %v404_v22 = vmul.f32 3.8918573e-05, %v392_v17 }
  0xbc   : > { %v394_v23 = vadd.f32 0.00028619796, %v393_v19  ;;  %v1089_v24 = vmul.f32 0.70710677, %v1083_v20  ;;  %v405_v25 = vadd.f32 0.001143296, %v404_v22 }
  0xbe   : > { %v431_v26 = vmul.f32 %v1089_v24, %v1089_v24  ;;  %v395_v28 = vmul.f32 %v394_v23, %v392_v17  ;;  %v406_v29 = vmul.f32 %v405_v25, %v392_v17 }
  0xc0   : > { %v432_v30 = vmin.f32 %v431_v26, 16.0  ;;  %v407_v31 = vadd.f32 0.014752088, %v406_v29  ;;  %v396_v35 = vadd.f32 0.0036580483, %v395_v28 }
  0xc2   : > { %v433_v32 = vmul.f32 2.1237322e-06, %v432_v30  ;;  %v444_v34 = vmul.f32 3.8918573e-05, %v432_v30  ;;  %v408_v36 = vmul.f32 %v407_v31, %v392_v17  ;;  %v397_v43 = vmul.f32 %v396_v35, %v392_v17 }
  0xc3   : > { %v388_v35 = vmul.f32 0.5, %v1083_v20 }
  0xc4   : > { %v434_v37 = vadd.f32 0.00028619796, %v433_v32  ;;  %v445_v38 = vadd.f32 0.001143296, %v444_v34  ;;  %v409_v39 = vadd.f32 0.112945676, %v408_v36 }
  0xc5   : > { %v398_v50 = vadd.f32 0.05243302, %v397_v43  ;;  %v387_v34 = vmul.f32 0.5, %v1070_v12 }
  0xc6   : > { %v435_v40 = vmul.f32 %v434_v37, %v432_v30  ;;  %v446_v42 = vmul.f32 %v445_v38, %v432_v30  ;;  %v410_v44 = vmul.f32 %v409_v39, %v392_v17 }
  0xc7   : > { %v399_v56 = vmul.f32 %v398_v50, %v392_v17 }
  0xc8   : > { %v436_v45 = vadd.f32 0.0036580483, %v435_v40  ;;  %v447_v46 = vadd.f32 0.014752088, %v446_v42  ;;  %v411_v47 = vadd.f32 0.4994258, %v410_v44 }
  0xc9   : > { %v400_v60 = vadd.f32 0.18741608, %v399_v56 }
  0xca   : > { %v448_v49 = vmul.f32 %v447_v46, %v432_v30  ;;  %v412_v51 = vmul.f32 %v411_v47, %v392_v17  ;;  %v437_v52 = vmul.f32 %v436_v45, %v432_v30 }
  0xcb   : > { %v401_v1 = vmul.f32 %v400_v60, %v392_v17 }
  0xcc   : > { %v449_v53 = vadd.f32 0.112945676, %v448_v49  ;;  %v413_v54 = vadd.f32 1.0, %v412_v51  ;;  %v438_v57 = vadd.f32 0.05243302, %v437_v52 }
  0xcd   : > { %v402_v7 = vadd.f32 1.1283791, %v401_v1 }
  0xce   : > { %v450_v55 = vmul.f32 %v449_v53, %v432_v30  ;;  %865 = vrcp.f32 %v413_v54  ;;  %v439_v61 = vmul.f32 %v438_v57, %v432_v30  ;;  %v425_v4 = vand.u32 2147483648, %v413_v54 }
  0xcf   : > { %v423_v6 = vand.u32 2147483647, %v413_v54  ;;  %vm419_vm1 = vweird.f32 %v413_v54  ;;  %v403_v16 = vmul.f32 %v402_v7, %v1073_v13 }
  0xd0   : > { %v451_v58 = vadd.f32 0.4994258, %v450_v55  ;;  %v440_v2 = vadd.f32 0.18741608, %v439_v61  ;;  %v426_v11 = vor.u32 1.1754944e-38, %v425_v4 }
  0xd1   : > { %vm424_vm3 = vcmp.eq.f32.partialorder %v423_v6, 8.507059e+37 }
  0xd2   : > { %v452_v59 = vmul.f32 %v451_v58, %v432_v30  ;;  %v441_v9 = vmul.f32 %v440_v2, %v432_v30 }
  0xd4   : > { %v453_v62 = vadd.f32 1.0, %v452_v59  ;;  %v866_v63 = vpop.eup %865  ;;  %v442_v19 = vadd.f32 1.1283791, %v441_v9 }
  0xd5   : > { %v415_v0 = vmul.f32 %v866_v63, %v413_v54  ;;  %vm420_vm0 = vweird.f32 %v866_v63 }
  0xd6   : > { %867 = vrcp.f32 %v453_v62  ;;  %vm421_vm2 = vmor %vm419_vm1, %vm420_vm0  ;;  %v465_v21 = vand.u32 2147483648, %v453_v62  ;;  %v463_v25 = vand.u32 2147483647, %v453_v62  ;;  %vm459_vm5 = vweird.f32 %v453_v62 }
  0xd7   : > { %v416_v3 = vsub.f32 1.0, %v415_v0  ;;  %v443_v28 = vmul.f32 %v442_v19, %v1089_v24  ;;  %v864_v24 = vld [vmem:[%s1153_s4] ss:$0 sm:$0xff] }
  0xd8   : > { %v466_v27 = vor.u32 1.1754944e-38, %v465_v21  ;;  %vm464_vm7 = vcmp.eq.f32.partialorder %v463_v25, 8.507059e+37 }
  0xd9   : > { %v417_v5 = vmul.f32 %v866_v63, %v416_v3 }
  0xdb   : > { %v418_v10 = vadd.f32 %v866_v63, %v417_v5 }
  0xdc   : > { %v868_v8 = vpop.eup %867 }
  0xdd   : > { %v455_v14 = vmul.f32 %v868_v8, %v453_v62  ;;  %v422_v15 = vsel %vm421_vm2, %v866_v63, %v418_v10  ;;  %vm460_vm4 = vweird.f32 %v868_v8 }
  0xde   : > { %v427_v18 = vsel %vm424_vm3, %v426_v11, %v422_v15  ;;  %vm461_vm6 = vmor %vm459_vm5, %vm460_vm4 }
  0xdf   : > { %v456_v17 = vsub.f32 1.0, %v455_v14  ;;  %v428_v22 = vmul.f32 %v427_v18, %v403_v16 }
  0xe1   : > { %v457_v23 = vmul.f32 %v868_v8, %v456_v17  ;;  %v748_v29 = vclamps-f32 %v428_v22, 1.0 }
  0xe3   : > { %v458_v26 = vadd.f32 %v868_v8, %v457_v23  ;;  %v471_v33 = vadd.f32 1.0, %v748_v29 }
  0xe5   : > { %v462_v30 = vsel %vm461_vm6, %v868_v8, %v458_v26  ;;  %v473_v37 = vmul.f32 %v471_v33, %v387_v34 }
  0xe6   : > { %v467_v13 = vsel %vm464_vm7, %v466_v27, %v462_v30 }
  0xe7   : > { %v468_v31 = vmul.f32 %v467_v13, %v443_v28 }
  0xe9   : > { %v749_v32 = vclamps-f32 %v468_v31, 1.0 }
  0xeb   : > { %v472_v36 = vadd.f32 1.0, %v749_v32 }
  0xed   : > { %v474_v38 = vmul.f32 %v472_v36, %v388_v35 }
  0xef   : > { %v477_v39 = vpack.c.bf16 %v474_v38, %v473_v37 }
  0xf1   : > { %550 = vmatmul.bf16.vlgmr.msra.gmra.mxu1 %v477_v39 }
 0x16e   : > { %v551_v40 = vpop.f32.mrf.mxu1 }
 0x16f   : > { %v569_v41 = vadd.f32 %v864_v24, %v551_v40 }
 0x171   : > { %571 = vst [vmem:[%s270_s9] sm:$0xff] %v569_v41 }
 0x176   : > { %v553_v12 = vpop.f32.mrf.mxu1 }
 0x177   : > { %v570_v20 = vadd.f32 %v864_v24, %v553_v12 }
 0x179   : > { %572 = vst [vmem:[%s270_s9 + $0x8] sm:$0xff] %v570_v20 }
 0x17a   : > { %896 = shalt.err (!%p893_p5)
}
 0x17b   : > { %s949_s17 = smov 128   ;;  %s950_s27 = smov 8  }
 0x17c   : > { %805 = dma.vmem_to_hbm [thread:$0]  (%p1021_p4), %s587_s10, 256, %s589_s11, %s574_s12, %s949_s17, %s949_s17, %s950_s27  }
 0x17d PF: > { %p811_p6 = scmp.ge.s32.totalorder %s947_s23, 2  ;;  %s603_s29 = sand.u32 1, %s927_s18  }
 0x17e   : > { %s604_s7 = scalar_lea.sflag [#allocation3], %s603_s29 }
 0x17f   : > { %p808_p7 = pnand %p811_p6, %p1028_p8 }
 0x181   : > { %p809_p9 = pneg %p808_p7 }
 0x183   : > { %922 = dma.done.wait (%p809_p9), %s604_s7, 256  }
 0x184   : > { %924 = vsyncadd (%p809_p9), %s604_s7, 4294967040  ;;  %s18_s23 = sadd.s32 1, %s947_s23   ;;  %s1157_s18 = smov %s931_s19 }
 0x185   : > { %p15_p10 = scmp.ge.s32.totalorder %s18_s23, 4   ;;  %s1158_s19 = smov %s935_s20 }
 0x186   : > { %s1159_s20 = smov %s1034_s6  ;;  %s1160_s21 = smov %s943_s22 }
 0x187   : > { %s1161_s22 = smov %s1163_s26  ;;  %17 = sbr.rel (!%p15_p10) target bundleno = 4 (0x4), region = 92 }
 0x18c   :  { %610 = vsyncpa [#allocation3], 1 }
 0x18d   :  { %612 = vsyncpa [#allocation3 + $0x1], 1 }

</bundles_post_ra>
